<compile_context>
chip_gen: v7x
topology: tpu7x:2x2x1
jax: 0.10.0
libtpu: 0.0.40
codegen_flags: <defaults>
</compile_context>

<pallas_src>
import functools

import jax
import jax.numpy as jnp
import numpy as np
from jax.experimental import pallas as pl
from jax.experimental.pallas import tpu as pltpu


def _round_up(x, m):
    return (x + m - 1) // m * m


# ----------------------------- Pallas kernels ------------------------------ #

def _fc_relu_kernel(x_ref, w_ref, b_ref, o_ref):
    """Single-K-block variant: matmul + bias + ReLU fused, direct lane-dense store."""
    y = jnp.dot(x_ref[...].astype(jnp.bfloat16), w_ref[...],
                preferred_element_type=jnp.float32)
    o_ref[...] = jnp.maximum(y + b_ref[...], 0.0).astype(o_ref.dtype)


def _fc_relu_kernel_ktiled(x_ref, w_ref, b_ref, o_ref, acc_ref):
    """K-tiled variant: f32 accumulator scratch, bias+ReLU epilogue in finalize."""
    k = pl.program_id(2)

    @pl.when(k == 0)
    def _():
        acc_ref[...] = jnp.zeros_like(acc_ref)

    acc_ref[...] += jnp.dot(x_ref[...].astype(jnp.bfloat16), w_ref[...],
                            preferred_element_type=jnp.float32)

    @pl.when(k == pl.num_programs(2) - 1)
    def _():
        o_ref[...] = jnp.maximum(acc_ref[...] + b_ref[...], 0.0).astype(o_ref.dtype)


# ------------------------- one-time parameter prep ------------------------- #

def prepare_fc_params(weight, bias, *, compute_dtype=jnp.bfloat16):
    """Hoisted out of the per-call path (do once at parameter load).

    weight: (out_ch, in_ch)  (PyTorch nn.Linear layout)
    bias:   (out_ch,)
    Returns:
      w_kn: (in_ch, out_ch_padded) in compute_dtype  (lane-dense columns, mult. of 128)
      b_1n: (1, out_ch_padded) float32
    """
    out_ch, in_ch = weight.shape
    np_pad = _round_up(out_ch, 128)
    w_kn = jnp.asarray(weight).T.astype(compute_dtype)          # (in_ch, out_ch)
    b = jnp.asarray(bias).astype(jnp.float32)
    if np_pad != out_ch:
        w_kn = jnp.pad(w_kn, ((0, 0), (0, np_pad - out_ch)))
        b = jnp.pad(b, (0, np_pad - out_ch))
    return w_kn, b.reshape(1, np_pad)


# ------------------------------ tile planning ------------------------------ #

def _pick_tiles(M, K, Np):
    tm = min(512, _round_up(max(M, 1), 8))                      # sublane-aligned rows
    tn = 512 if Np % 512 == 0 else (256 if Np % 256 == 0 else 128)
    if K <= 2048:
        tk = K                                                  # single K block
    else:
        tk = next((c for c in (2048, 1024, 512, 256, 128) if K % c == 0), K)
        # TODO(synk): a huge in_ch with no 128-multiple divisor falls back to full-K;
        # pad in_ch once at parameter-load time if that ever overflows VMEM.
    return tm, tn, tk


# ------------------------------- fused call --------------------------------- #

def fc_relu_pallas(x, w_kn, b_1n, *, out_ch, out_dtype=None):
    """relu(x @ W^T + b) with W/b preprocessed by prepare_fc_params. x: (..., in_ch)."""
    in_ch = x.shape[-1]
    K, Np = w_kn.shape
    assert K == in_ch, (K, in_ch)
    lead = x.shape[:-1]
    M = 1
    for d in lead:
        M *= int(d)
    x2 = x.reshape(M, in_ch)
    out_dtype = out_dtype or x.dtype

    tm, tn, tk = _pick_tiles(M, in_ch, Np)
    gm, gn, gk = pl.cdiv(M, tm), Np // tn, pl.cdiv(in_ch, tk)

    # VMEM budget: double-buffered input/output tiles + accumulator, 25% headroom.
    x_b = jnp.dtype(x.dtype).itemsize
    w_b = jnp.dtype(w_kn.dtype).itemsize
    o_b = jnp.dtype(out_dtype).itemsize
    vmem = (2 * tm * tk * x_b + 2 * tk * tn * w_b + 2 * tm * tn * o_b + 2 * tn * 4)
    if gk > 1:
        vmem += tm * tn * 4
    vmem_limit = min(max(int(vmem * 1.25), 32 << 20), 64 << 20)

    if gk == 1:
        grid = (gm, gn)
        in_specs = [
            pl.BlockSpec((tm, in_ch), lambda i, j: (i, 0)),      # row tile of x
            pl.BlockSpec((in_ch, tn), lambda i, j: (0, j)),      # weight column tile
            pl.BlockSpec((1, tn), lambda i, j: (0, j)),          # bias column tile
        ]
        out_specs = pl.BlockSpec((tm, tn), lambda i, j: (i, j))
        scratch = []
        kernel = _fc_relu_kernel
        dims = ("parallel", "parallel")
    else:
        grid = (gm, gn, gk)
        in_specs = [
            pl.BlockSpec((tm, tk), lambda i, j, k: (i, k)),
            pl.BlockSpec((tk, tn), lambda i, j, k: (k, j)),
            pl.BlockSpec((1, tn), lambda i, j, k: (0, j)),
        ]
        out_specs = pl.BlockSpec((tm, tn), lambda i, j, k: (i, j))
        scratch = [pltpu.VMEM((tm, tn), jnp.float32)]
        kernel = _fc_relu_kernel_ktiled
        dims = ("parallel", "parallel", "arbitrary")

    out = pl.pallas_call(
        kernel,
        out_shape=jax.ShapeDtypeStruct((M, Np), out_dtype),
        grid_spec=pltpu.PrefetchScalarGridSpec(
            num_scalar_prefetch=0,
            grid=grid,
            in_specs=in_specs,
            out_specs=out_specs,
            scratch_shapes=scratch,
        ),
        compiler_params=pltpu.CompilerParams(
            dimension_semantics=dims,
            vmem_limit_bytes=vmem_limit,
        ),
    )(x2, w_kn, b_1n)

    if Np != out_ch:
        out = out[:, :out_ch]
    return out.reshape(*lead, out_ch)


@functools.partial(jax.jit, static_argnames=("out_ch",))
def fc_layer_forward(x, w_kn, b_1n, *, out_ch):
    return fc_relu_pallas(x, w_kn, b_1n, out_ch=out_ch)


# -------------------------- pure-JAX reference ----------------------------- #

def _ref_fc_layer(x, weight, bias, compute_dtype=jnp.bfloat16):
    # Same math as the kernel: bf16 operands, f32 accumulation, f32 bias + ReLU.
    xc = x.astype(compute_dtype).astype(jnp.float32)
    wc = weight.astype(compute_dtype).astype(jnp.float32)
    y = jnp.einsum("...k,ok->...o", xc, wc) + bias.astype(jnp.float32)
    return jnp.maximum(y, 0.0).astype(x.dtype)


# --------------------------------- main ------------------------------------ #

if __name__ == "__main__":
    key = jax.random.PRNGKey(0)
    B, S, IN_CH, OUT_CH = 2, 8, 32, 64          # batch=2, seq=8, hidden=32 -> 64

    k = jax.random.split(key, 3)
    x = jax.random.normal(k[0], (B, S, IN_CH), jnp.float32)
    weight = jax.random.normal(k[1], (OUT_CH, IN_CH), jnp.float32) * 0.1
    bias = jax.random.normal(k[2], (OUT_CH,), jnp.float32) * 0.1

    # One-time parameter preprocessing (transpose + lane padding + bf16 cast).
    w_kn, b_1n = prepare_fc_params(weight, bias)

    out = fc_layer_forward(x, w_kn, b_1n, out_ch=OUT_CH)
    out = jax.block_until_ready(out)

    ref = _ref_fc_layer(x, weight, bias)
    np.testing.assert_allclose(np.asarray(out), np.asarray(ref), atol=2e-3, rtol=2e-3)

    assert out.shape == (B, S, OUT_CH)
    print("KERNEL_OK")
</pallas_src>

<mosaic_0001>
module attributes {stable_mosaic.version = 11 : i64} {
  func.func @_fc_relu_kernel(%arg0: i32, %arg1: i32, %arg2: memref<16x32xf32, #tpu.memory_space<vmem>>, %arg3: memref<32x128xbf16, #tpu.memory_space<vmem>>, %arg4: memref<1x128xf32, #tpu.memory_space<vmem>>, %arg5: memref<16x128xf32, #tpu.memory_space<vmem>>) attributes {dimension_semantics = [#tpu.dimension_semantics<parallel>, #tpu.dimension_semantics<parallel>], iteration_bounds = array<i64: 1, 1>, scalar_prefetch = 0 : i64, scratch_operands = 0 : i64, tpu.core_type = #tpu.core_type<tc>, window_params = [{transform_indices = @transform_0, window_bounds = array<i64: 16, 32>}, {transform_indices = @transform_1, window_bounds = array<i64: 32, 128>}, {transform_indices = @transform_2, window_bounds = array<i64: 1, 128>}, {transform_indices = @transform_3, window_bounds = array<i64: 16, 128>}]} {
    %c0 = arith.constant 0 : index
    %c0_0 = arith.constant 0 : index
    %0 = vector.load %arg2[%c0, %c0_0] : memref<16x32xf32, #tpu.memory_space<vmem>>, vector<16x32xf32>
    %1 = arith.truncf %0 : vector<16x32xf32> to vector<16x32xbf16>
    %c0_1 = arith.constant 0 : index
    %c0_2 = arith.constant 0 : index
    %2 = vector.load %arg3[%c0_1, %c0_2] : memref<32x128xbf16, #tpu.memory_space<vmem>>, vector<32x128xbf16>
    %cst = arith.constant dense<0.000000e+00> : vector<16x128xf32>
    %3 = tpu.matmul %1, %2, %cst {dimension_numbers = #tpu.dot_dimension_numbers<[1], [0], [0], [1], [0, 0, 1, 1], [], []>} : vector<16x32xbf16>, vector<32x128xbf16>, vector<16x128xf32> -> vector<16x128xf32>
    %c0_3 = arith.constant 0 : index
    %c0_4 = arith.constant 0 : index
    %4 = vector.load %arg4[%c0_3, %c0_4] : memref<1x128xf32, #tpu.memory_space<vmem>>, vector<1x128xf32>
    %5 = vector.broadcast %4 : vector<1x128xf32> to vector<16x128xf32>
    %6 = arith.addf %3, %5 : vector<16x128xf32>
    %cst_5 = arith.constant 0.000000e+00 : f32
    %7 = vector.broadcast %cst_5 : f32 to vector<16x128xf32>
    %8 = arith.maximumf %6, %7 : vector<16x128xf32>
    %c0_6 = arith.constant 0 : index
    %c0_7 = arith.constant 0 : index
    %9 = vector.load %arg5[%c0_6, %c0_7] : memref<16x128xf32, #tpu.memory_space<vmem>>, vector<16x128xf32>
    tpu.vector_store %arg5[%c0_6, %c0_7], %8 {strides = array<i32>} : memref<16x128xf32, #tpu.memory_space<vmem>>, vector<16x128xf32>,
    return
  }
  func.func @transform_0(%arg0: i32, %arg1: i32) -> (i32, i32) {
    %c0_i32 = arith.constant 0 : i32
    %c0_i32_0 = arith.constant 0 : i32
    return %arg0, %c0_i32 : i32, i32
  }
  func.func @transform_1(%arg0: i32, %arg1: i32) -> (i32, i32) {
    %c0_i32 = arith.constant 0 : i32
    %c0_i32_0 = arith.constant 0 : i32
    return %c0_i32, %arg1 : i32, i32
  }
  func.func @transform_2(%arg0: i32, %arg1: i32) -> (i32, i32) {
    %c0_i32 = arith.constant 0 : i32
    %c0_i32_0 = arith.constant 0 : i32
    return %c0_i32, %arg1 : i32, i32
  }
  func.func @transform_3(%arg0: i32, %arg1: i32) -> (i32, i32) {
    %c0_i32 = arith.constant 0 : i32
    return %arg0, %arg1 : i32, i32
  }
}

</mosaic_0001>

<bundles_post_ra>
// kernel: fc_layer_forward.1
= control target key start
LH: loop header
LB: loop body
LE: loop exit
PB: predicated region body
PF: predicated region fallthrough
CT: control target
= control target key end

     0   :  { %8 = vsyncpa [#allocation3], 0  ;;  %s258_s0 = inlined_call_operand.hbm [shape: f32[16,32], index: 0, kind: input, shape index: {}]   ;;  %s259_s1 = inlined_call_operand.hbm [shape: bf16[32,128], index: 1, kind: input, shape index: {}]   ;;  %s260_s2 = inlined_call_operand.vmem [shape: f32[1,128], index: 2, kind: input, shape index: {}]   ;;  %s261_s3 = inlined_call_operand.vmem [shape: f32[16,128], index: 3, kind: output, shape index: {}]  }
   0x1   :  { %9 = vsyncpa [#allocation5], 0  ;;  %s197_s12 = smov [#allocation2]   ;;  %s149_s16 = scalar_lea.hbm %s258_s0, 256 }
   0x2   :  { %s15_s13 = sshll.u32 %s197_s12, 4  ;;  %p150_p0 = scmp.ne.s32.totalorder %s258_s0, %s149_s16  ;;  %s16_s13 = int_to_ptr.vmem [resolvable:$true] %s15_s13 }
   0x3   :  { %p153_p1 = scmp.lt.u32.totalorder %s149_s16, %s258_s0 }
   0x5   :  { %p155_p2 = pnand %p153_p1, %p150_p0 }
   0x7   :  { %158 = shalt.err (!%p155_p2)
}
   0x8   :  { %s159_s21 = scalar_lea.vmem %s16_s13, 256  ;;  %p164_p4 = scmp.lt.s32.totalorder %s16_s13, %s16_s13 }
   0x9   :  { %p160_p3 = scmp.ne.s32.totalorder %s16_s13, %s159_s21  ;;  %p165_p5 = scmp.lt.s32.totalorder %s159_s21, %s159_s21 }
   0xb   :  { %p166_p6 = por %p165_p5, %p164_p4 }
   0xd   :  { %p167_p7 = pnand %p166_p6, %p160_p3 }
   0xf   :  { %170 = shalt.err (!%p167_p7)
}
  0x10   :  { %s198_s22 = smov 128   ;;  %s199_s23 = smov 8  }
  0x11   :  { %21 = dma.hbm_to_vmem [thread:$0]  %s258_s0, 256, %s16_s13, [#allocation3], %s198_s22, %s198_s22, %s199_s23  }
  0x12   :  { %s200_s26 = smov [#allocation4]   ;;  %s171_s30 = scalar_lea.hbm %s259_s1, 256 }
  0x13   :  { %s27_s27 = sshll.u32 %s200_s26, 4  ;;  %p172_p8 = scmp.ne.s32.totalorder %s259_s1, %s171_s30  ;;  %s28_s27 = int_to_ptr.vmem [resolvable:$true] %s27_s27 }
  0x14   :  { %p175_p9 = scmp.lt.u32.totalorder %s171_s30, %s259_s1 }
  0x16   :  { %p177_p10 = pnand %p175_p9, %p172_p8 }
  0x18   :  { %180 = shalt.err (!%p177_p10)
}
  0x19   :  { %s181_s8 = scalar_lea.vmem %s28_s27, 256  ;;  %p186_p12 = scmp.lt.s32.totalorder %s28_s27, %s28_s27 }
  0x1a   :  { %p182_p11 = scmp.ne.s32.totalorder %s28_s27, %s181_s8  ;;  %p187_p13 = scmp.lt.s32.totalorder %s181_s8, %s181_s8 }
  0x1c   :  { %p188_p0 = por %p187_p13, %p186_p12 }
  0x1e   :  { %p189_p1 = pnand %p188_p0, %p182_p11 }
  0x20   :  { %192 = shalt.err (!%p189_p1)
}
  0x21   :  { %s201_s0 = smov 64   ;;  %s202_s9 = smov 4  }
  0x22   :  { %33 = dma.hbm_to_vmem [thread:$0]  %s259_s1, 256, %s28_s27, [#allocation5], %s201_s0, %s201_s0, %s202_s9  }
  0x23   :  { %193 = dma.done.wait [#allocation3], 256  }
  0x24   :  { %194 = vsyncadd [#allocation3], 4294967040 }
  0x25   :  { %195 = dma.done.wait [#allocation5], 256  }
  0x26   :  { %196 = vsyncadd [#allocation5], 4294967040  ;;  %v203_v0 = vmov 0.0   ;;  %vm204_vm0 = vmmov 0   ;;  %v147_v1 = vld [vmem:[#allocation4] sm:$0xff]   ;;  %v148_v2 = vld [vmem:[#allocation4 + $0x8] sm:$0xff]  }
  0x27   :  { %131 = vmatprep.subr.bf16.mxu0 %v203_v0  ;;  %135 = vmatprep.mubr.msk.bf16.mxu0 %vm204_vm0, %v203_v0  ;;  %v43_v3 = vld [vmem:[#allocation2] sm:$0xff]  ;;  %v44_v4 = vld [vmem:[#allocation2 + $0x8] sm:$0xff]  ;;  %vm69_vm1 = vcmask 261120  }
  0x28   :  { %132 = vmatpush3.bf16.msra.mxu0 %v147_v1  ;;  %v45_v5 = vpack.c.bf16 %v44_v4, %v43_v3  ;;  %v124_v6 = vld [vmem:[%s260_s2] ss:$0 sm:$0xff] }
  0x29   :  { %133 = vmatprep.subr.bf16.mxu0 %v203_v0 }
  0x2c   :  { %134 = vmatpush3.bf16.msra.mxu0 %v148_v2 }
  0x2f   :  { %136 = vmatmul.mubr.msk.bf16.vlgmr.msra.gmra.mrb[0].mxu0 %vm69_vm1, %v45_v5 }
 0x102   :  { %v107_v7 = vpop.f32.mrb[0].mxu0 }
 0x103   :  { %v108_v8 = vadd.f32 %v124_v6, %v107_v7  ;;  %v137_v9 = vpop.f32.mrb[1].mxu0 }
 0x104   :  { %v110_v10 = vpop.f32.mrb[2].mxu0 }
 0x105   :  { %v114_v11 = vmax.f32 %v108_v8, 0.0  ;;  %v111_v12 = vadd.f32 %v124_v6, %v110_v10  ;;  %v138_v13 = vpop.f32.mrb[3].mxu0 }
 0x107   :  { %116 = vst [vmem:[%s261_s3] sm:$0xff] %v114_v11  ;;  %v115_v14 = vmax.f32 %v111_v12, 0.0 }
 0x109   :  { %117 = vst [vmem:[%s261_s3 + $0x8] sm:$0xff] %v115_v14 }
 0x10a   :  { %122 = vsyncpa [#allocation3], 1 }
 0x10b   :  { %123 = vsyncpa [#allocation5], 1 }

</bundles_post_ra>
